<compile_context>
chip_gen: v7x
topology: tpu7x:2x2x1
jax: 0.10.0
libtpu: 0.0.40
codegen_flags: <defaults>
</compile_context>

<pallas_src>
import jax
import jax.numpy as jnp
from jax.experimental import pallas as pl
from jax.experimental.pallas import tpu as pltpu


def mlp_kernel(x_ref, w1_ref, b1_ref, w2_ref, b2_ref, w3_ref, b3_ref, o_ref):
    # Fused 3-layer MLP hot path. Dots run in bf16 on the MXU with f32
    # accumulation; bias + ReLU run in f32 on the VPU.
    h = jnp.dot(x_ref[...], w1_ref[...], preferred_element_type=jnp.float32)
    h = jnp.maximum(h + b1_ref[...], 0.0)
    h = jnp.dot(h.astype(w2_ref.dtype), w2_ref[...],
                preferred_element_type=jnp.float32)
    h = jnp.maximum(h + b2_ref[...], 0.0)
    o = jnp.dot(h.astype(w3_ref.dtype), w3_ref[...],
                preferred_element_type=jnp.float32)
    o_ref[...] = (o + b3_ref[...]).astype(o_ref.dtype)


def _round_up(x, m):
    return ((x + m - 1) // m) * m


def classifier_forward(x, params, *, tile_b=1024):
    """x: [B, input_dim] float32; params: dict of f32 weights/biases."""
    w1, b1, w2, b2, w3, b3 = (
        params["w1"], params["b1"], params["w2"],
        params["b2"], params["w3"], params["b3"],
    )
    B, d_in = x.shape
    h1, h2 = w1.shape[1], w2.shape[1]
    d_out = w3.shape[1]

    # bf16 matmul operands (MXU throughput + halved HBM read of x).
    xb = x.astype(jnp.bfloat16)
    w1b = w1.astype(jnp.bfloat16)
    w2b = w2.astype(jnp.bfloat16)
    w3b = w3.astype(jnp.bfloat16)

    # Batch tile: multiple of 8 sublanes (or the full batch if smaller);
    # capped so 2x(x tile) + intermediates stay well under the default
    # scoped-VMEM limit on every TPU generation.
    tb = min(max(tile_b, 8), _round_up(B, 8))
    grid = (pl.cdiv(B, tb),)

    # Weights/biases: whole-array block, constant index_map -> DMA'd once and
    # held VMEM-resident across all grid steps.
    def resident(a):
        nd = a.ndim
        return pl.BlockSpec(a.shape, lambda i, _nd=nd: (0,) * _nd)

    flops = 2 * B * (d_in * h1 + h1 * h2 + h2 * d_out)
    weight_bytes = (w1b.size + w2b.size + w3b.size) * 2 \
        + (b1.size + b2.size + b3.size) * 4
    bytes_accessed = B * d_in * 2 + B * d_out * 4 + int(weight_bytes)

    return pl.pallas_call(
        mlp_kernel,
        out_shape=jax.ShapeDtypeStruct((B, d_out), jnp.float32),
        grid=grid,
        in_specs=[
            pl.BlockSpec((tb, d_in), lambda i: (i, 0)),   # x: streamed by batch tile
            resident(w1b), resident(b1),
            resident(w2b), resident(b2),
            resident(w3b), resident(b3),
        ],
        out_specs=pl.BlockSpec((tb, d_out), lambda i: (i, 0)),
        compiler_params=pltpu.CompilerParams(
            dimension_semantics=("parallel",)),            # v7x: 2 TCs share the batch
        cost_estimate=pl.CostEstimate(
            flops=flops, transcendentals=0, bytes_accessed=bytes_accessed),
    )(xb, w1b, b1, w2b, b2, w3b, b3)


def init_params(key, input_dim=50, latent_dim=(128, 64), output_dim=10):
    """Deterministic init mirroring PyTorch nn.Linear default:
    U(-1/sqrt(fan_in), 1/sqrt(fan_in)) for both weight and bias."""
    dims = [input_dim, *latent_dim, output_dim]
    params = {}
    for i in range(len(dims) - 1):
        fan_in, fan_out = dims[i], dims[i + 1]
        key, kw, kb = jax.random.split(key, 3)
        bound = 1.0 / jnp.sqrt(jnp.float32(fan_in))
        params[f"w{i+1}"] = jax.random.uniform(
            kw, (fan_in, fan_out), jnp.float32, -bound, bound)
        params[f"b{i+1}"] = jax.random.uniform(
            kb, (1, fan_out), jnp.float32, -bound, bound)
    return params


def reference_forward(x, params):
    h = jnp.maximum(x @ params["w1"] + params["b1"], 0.0)
    h = jnp.maximum(h @ params["w2"] + params["b2"], 0.0)
    return h @ params["w3"] + params["b3"]


if __name__ == "__main__":
    key = jax.random.PRNGKey(0)
    k_x, k_p = jax.random.split(key)

    B, INPUT_DIM = 8, 50
    params = init_params(k_p, input_dim=INPUT_DIM,
                         latent_dim=(128, 64), output_dim=10)

    # Small-batch check (single grid step).
    x = jax.random.normal(k_x, (B, INPUT_DIM), jnp.float32)
    out = jax.block_until_ready(classifier_forward(x, params))
    ref = reference_forward(x, params)
    assert out.shape == (B, 10)
    # bf16 matmul operands -> compare to the f32 reference with a loosened tol.
    assert jnp.allclose(out, ref, atol=5e-2, rtol=5e-2), "mismatch vs reference"

    # Multi-step grid + remainder-tile check (B not a multiple of the tile).
    B2 = 300
    x2 = jax.random.normal(jax.random.PRNGKey(1), (B2, INPUT_DIM), jnp.float32)
    out2 = jax.block_until_ready(classifier_forward(x2, params, tile_b=128))
    ref2 = reference_forward(x2, params)
    assert out2.shape == (B2, 10)
    assert jnp.allclose(out2, ref2, atol=5e-2, rtol=5e-2), "mismatch (tiled) vs reference"

    print("KERNEL_OK")
</pallas_src>

<mosaic_0001>
module attributes {stable_mosaic.version = 11 : i64} {
  func.func @mlp_kernel(%arg0: i32, %arg1: memref<8x50xbf16, #tpu.memory_space<vmem>>, %arg2: memref<50x128xbf16, #tpu.memory_space<vmem>>, %arg3: memref<1x128xf32, #tpu.memory_space<vmem>>, %arg4: memref<128x64xbf16, #tpu.memory_space<vmem>>, %arg5: memref<1x64xf32, #tpu.memory_space<vmem>>, %arg6: memref<64x10xbf16, #tpu.memory_space<vmem>>, %arg7: memref<1x10xf32, #tpu.memory_space<vmem>>, %arg8: memref<8x10xf32, #tpu.memory_space<vmem>>) attributes {dimension_semantics = [#tpu.dimension_semantics<parallel>], iteration_bounds = array<i64: 1>, scalar_prefetch = 0 : i64, scratch_operands = 0 : i64, tpu.core_type = #tpu.core_type<tc>, window_params = [{transform_indices = @transform_0, window_bounds = array<i64: 8, 50>}, {pipeline_mode = #tpu.pipeline_mode<synchronous>, transform_indices = @transform_1, window_bounds = array<i64: 50, 128>}, {pipeline_mode = #tpu.pipeline_mode<synchronous>, transform_indices = @transform_2, window_bounds = array<i64: 1, 128>}, {pipeline_mode = #tpu.pipeline_mode<synchronous>, transform_indices = @transform_3, window_bounds = array<i64: 128, 64>}, {pipeline_mode = #tpu.pipeline_mode<synchronous>, transform_indices = @transform_4, window_bounds = array<i64: 1, 64>}, {pipeline_mode = #tpu.pipeline_mode<synchronous>, transform_indices = @transform_5, window_bounds = array<i64: 64, 10>}, {pipeline_mode = #tpu.pipeline_mode<synchronous>, transform_indices = @transform_6, window_bounds = array<i64: 1, 10>}, {transform_indices = @transform_7, window_bounds = array<i64: 8, 10>}]} {
    %c0 = arith.constant 0 : index
    %c0_0 = arith.constant 0 : index
    %0 = vector.load %arg1[%c0, %c0_0] : memref<8x50xbf16, #tpu.memory_space<vmem>>, vector<8x50xbf16>
    %c0_1 = arith.constant 0 : index
    %c0_2 = arith.constant 0 : index
    %1 = vector.load %arg2[%c0_1, %c0_2] : memref<50x128xbf16, #tpu.memory_space<vmem>>, vector<50x128xbf16>
    %cst = arith.constant dense<0.000000e+00> : vector<8x128xf32>
    %2 = tpu.matmul %0, %1, %cst {dimension_numbers = #tpu.dot_dimension_numbers<[1], [0], [0], [1], [0, 0, 1, 1], [], []>} : vector<8x50xbf16>, vector<50x128xbf16>, vector<8x128xf32> -> vector<8x128xf32>
    %c0_3 = arith.constant 0 : index
    %c0_4 = arith.constant 0 : index
    %3 = vector.load %arg3[%c0_3, %c0_4] : memref<1x128xf32, #tpu.memory_space<vmem>>, vector<1x128xf32>
    %4 = vector.broadcast %3 : vector<1x128xf32> to vector<8x128xf32>
    %5 = arith.addf %2, %4 : vector<8x128xf32>
    %cst_5 = arith.constant 0.000000e+00 : f32
    %6 = vector.broadcast %cst_5 : f32 to vector<8x128xf32>
    %7 = arith.maximumf %5, %6 : vector<8x128xf32>
    %8 = arith.truncf %7 : vector<8x128xf32> to vector<8x128xbf16>
    %c0_6 = arith.constant 0 : index
    %c0_7 = arith.constant 0 : index
    %9 = vector.load %arg4[%c0_6, %c0_7] : memref<128x64xbf16, #tpu.memory_space<vmem>>, vector<128x64xbf16>
    %cst_8 = arith.constant dense<0.000000e+00> : vector<8x64xf32>
    %10 = tpu.matmul %8, %9, %cst_8 {dimension_numbers = #tpu.dot_dimension_numbers<[1], [0], [0], [1], [0, 0, 1, 1], [], []>} : vector<8x128xbf16>, vector<128x64xbf16>, vector<8x64xf32> -> vector<8x64xf32>
    %c0_9 = arith.constant 0 : index
    %c0_10 = arith.constant 0 : index
    %11 = vector.load %arg5[%c0_9, %c0_10] : memref<1x64xf32, #tpu.memory_space<vmem>>, vector<1x64xf32>
    %12 = vector.broadcast %11 : vector<1x64xf32> to vector<8x64xf32>
    %13 = arith.addf %10, %12 : vector<8x64xf32>
    %cst_11 = arith.constant 0.000000e+00 : f32
    %14 = vector.broadcast %cst_11 : f32 to vector<8x64xf32>
    %15 = arith.maximumf %13, %14 : vector<8x64xf32>
    %16 = arith.truncf %15 : vector<8x64xf32> to vector<8x64xbf16>
    %c0_12 = arith.constant 0 : index
    %c0_13 = arith.constant 0 : index
    %17 = vector.load %arg6[%c0_12, %c0_13] : memref<64x10xbf16, #tpu.memory_space<vmem>>, vector<64x10xbf16>
    %cst_14 = arith.constant dense<0.000000e+00> : vector<8x10xf32>
    %18 = tpu.matmul %16, %17, %cst_14 {dimension_numbers = #tpu.dot_dimension_numbers<[1], [0], [0], [1], [0, 0, 1, 1], [], []>} : vector<8x64xbf16>, vector<64x10xbf16>, vector<8x10xf32> -> vector<8x10xf32>
    %c0_15 = arith.constant 0 : index
    %c0_16 = arith.constant 0 : index
    %19 = vector.load %arg7[%c0_15, %c0_16] : memref<1x10xf32, #tpu.memory_space<vmem>>, vector<1x10xf32>
    %20 = vector.broadcast %19 : vector<1x10xf32> to vector<8x10xf32>
    %21 = arith.addf %18, %20 : vector<8x10xf32>
    %c0_17 = arith.constant 0 : index
    %c0_18 = arith.constant 0 : index
    %22 = vector.load %arg8[%c0_17, %c0_18] : memref<8x10xf32, #tpu.memory_space<vmem>>, vector<8x10xf32>
    tpu.vector_store %arg8[%c0_17, %c0_18], %21 {strides = array<i32>} : memref<8x10xf32, #tpu.memory_space<vmem>>, vector<8x10xf32>,
    return
  }
  func.func @transform_0(%arg0: i32) -> (i32, i32) {
    %c0_i32 = arith.constant 0 : i32
    %c0_i32_0 = arith.constant 0 : i32
    return %arg0, %c0_i32 : i32, i32
  }
  func.func @transform_1(%arg0: i32) -> (i32, i32) {
    %c0_i32 = arith.constant 0 : i32
    %c0_i32_0 = arith.constant 0 : i32
    %c0_i32_1 = arith.constant 0 : i32
    return %c0_i32, %c0_i32_0 : i32, i32
  }
  func.func @transform_2(%arg0: i32) -> (i32, i32) {
    %c0_i32 = arith.constant 0 : i32
    %c0_i32_0 = arith.constant 0 : i32
    %c0_i32_1 = arith.constant 0 : i32
    return %c0_i32, %c0_i32_0 : i32, i32
  }
  func.func @transform_3(%arg0: i32) -> (i32, i32) {
    %c0_i32 = arith.constant 0 : i32
    %c0_i32_0 = arith.constant 0 : i32
    %c0_i32_1 = arith.constant 0 : i32
    return %c0_i32, %c0_i32_0 : i32, i32
  }
  func.func @transform_4(%arg0: i32) -> (i32, i32) {
    %c0_i32 = arith.constant 0 : i32
    %c0_i32_0 = arith.constant 0 : i32
    %c0_i32_1 = arith.constant 0 : i32
    return %c0_i32, %c0_i32_0 : i32, i32
  }
  func.func @transform_5(%arg0: i32) -> (i32, i32) {
    %c0_i32 = arith.constant 0 : i32
    %c0_i32_0 = arith.constant 0 : i32
    %c0_i32_1 = arith.constant 0 : i32
    return %c0_i32, %c0_i32_0 : i32, i32
  }
  func.func @transform_6(%arg0: i32) -> (i32, i32) {
    %c0_i32 = arith.constant 0 : i32
    %c0_i32_0 = arith.constant 0 : i32
    %c0_i32_1 = arith.constant 0 : i32
    return %c0_i32, %c0_i32_0 : i32, i32
  }
  func.func @transform_7(%arg0: i32) -> (i32, i32) {
    %c0_i32 = arith.constant 0 : i32
    %c0_i32_0 = arith.constant 0 : i32
    return %arg0, %c0_i32 : i32, i32
  }
}

</mosaic_0001>

<bundles_post_ra>
// kernel: tpu_custom_call.1
= control target key start
LH: loop header
LB: loop body
LE: loop exit
PB: predicated region body
PF: predicated region fallthrough
CT: control target
= control target key end

     0   :  { %v453_v1 = vmov 0.0   ;;  %vm454_vm0 = vmmov 0   ;;  %vm68_vm1 = vcmask 1040384   ;;  %vm64_vm2 = vcmask 408576   ;;  %s590_s0 = inlined_call_operand.vmem [shape: bf16[8,50], index: 0, kind: input, shape index: {}]   ;;  %s591_s1 = inlined_call_operand.vmem [shape: bf16[50,128], index: 1, kind: input, shape index: {}]   ;;  %s592_s2 = inlined_call_operand.vmem [shape: f32[1,128], index: 2, kind: input, shape index: {}]   ;;  %s593_s3 = inlined_call_operand.vmem [shape: bf16[128,64], index: 3, kind: input, shape index: {}]   ;;  %s594_s4 = inlined_call_operand.vmem [shape: f32[1,64], index: 4, kind: input, shape index: {}]   ;;  %s595_s5 = inlined_call_operand.vmem [shape: bf16[64,10], index: 5, kind: input, shape index: {}]   ;;  %s596_s6 = inlined_call_operand.vmem [shape: f32[1,10], index: 6, kind: input, shape index: {}]   ;;  %s597_s7 = inlined_call_operand.hbm [shape: f32[8,10], index: 7, kind: output, shape index: {}]  }
   0x1   :  { %v413_v0 = vld [vmem:[%s591_s1] sm:$0xff]   ;;  %366 = vmatprep.subr.bf16.mxu0 %v453_v1  ;;  %378 = vmatprep.subr.bf16.mxu1 %v453_v1  ;;  %v414_v2 = vld [vmem:[%s591_s1 + $0x8] sm:$0xff]   ;;  %v416_v3 = vld [vmem:[%s591_s1 + $0x18] ss:$0 sps:$4 sm:$0x11]  }
   0x2   :  { %367 = vmatpush3.bf16.msra.mxu0 %v413_v0  ;;  %374 = vmatprep.mubr.msk.bf16.mxu0 %vm454_vm0, %v453_v1  ;;  %v417_v4 = vld [vmem:[%s593_s3] sm:$0xff]   ;;  %v415_v5 = vld [vmem:[%s591_s1 + $0x10] sm:$0xff]   ;;  %v418_v6 = vld [vmem:[%s593_s3 + $0x8] sm:$0xff]   ;;  %v70_v7 = vsel %vm68_vm1, %v416_v3, 0 }
   0x3   :  { %368 = vmatprep.subr.bf16.mxu0 %v453_v1  ;;  %394 = vmatprep.mubr.msk.bf16.mxu1 %vm454_vm0, %v453_v1  ;;  %v419_v8 = vld [vmem:[%s593_s3 + $0x10] sm:$0xff]   ;;  %v28_v9 = vld [vmem:[%s590_s0] sm:$0xf] }
   0x4   :  { %379 = vmatpush3.bf16.msra.mxu1 %v417_v4 }
   0x5   :  { %380 = vmatprep.subr.bf16.mxu1 %v453_v1 }
   0x6   :  { %369 = vmatpush3.bf16.msra.mxu0 %v414_v2 }
   0x7   :  { %370 = vmatprep.subr.bf16.mxu0 %v453_v1 }
   0x8   :  { %381 = vmatpush3.bf16.msra.mxu1 %v418_v6 }
   0x9   :  { %382 = vmatprep.subr.bf16.mxu1 %v453_v1 }
   0xa   :  { %371 = vmatpush3.bf16.msra.mxu0 %v415_v5 }
   0xb   :  { %372 = vmatprep.subr.bf16.mxu0 %v453_v1 }
   0xe   :  { %373 = vmatpush3.bf16.msra.mxu0 %v70_v7 }
   0xf   :  { %12 = vsyncpa [#allocation3], 0  ;;  %383 = vmatpush3.bf16.msra.mxu1 %v419_v8  ;;  %v420_v10 = vld [vmem:[%s593_s3 + $0x18] sm:$0xff]   ;;  %398 = vmatprep.subr.bf16.mxu0 %v453_v1  ;;  %v421_v11 = vld [vmem:[%s593_s3 + $0x20] sm:$0xff]   ;;  %vm266_vm3 = vcmask 523264   ;;  %s455_s14 = smov [#allocation2]  }
  0x10   :  { %384 = vmatprep.subr.bf16.mxu1 %v453_v1  ;;  %v422_v12 = vld [vmem:[%s593_s3 + $0x28] sm:$0xff]   ;;  %v423_v13 = vld [vmem:[%s593_s3 + $0x30] sm:$0xff]   ;;  %v424_v14 = vld [vmem:[%s593_s3 + $0x38] sm:$0xff]   ;;  %vm310_vm4 = vcmask 80896  }
  0x11   :  { %375 = vmatmul.mubr.msk.bf16.vlgmr.msra.gmra.mrb[0].mxu0 %vm64_vm2, %v28_v9  ;;  %v425_v15 = vld [vmem:[%s595_s5] sm:$0xff]   ;;  %v426_v16 = vld [vmem:[%s595_s5 + $0x8] sm:$0xff]   ;;  %v427_v25 = vld [vmem:[%s595_s5 + $0x10] sm:$0xff]  }
  0x12   :  { %406 = vmatprep.mubr.msk.bf16.mxu0 %vm454_vm0, %v453_v1  ;;  %399 = vmatpush3.bf16.msra.mxu0 %v425_v15  ;;  %v326_v17 = vld [vmem:[%s592_s2] ss:$0 sm:$0xff]  ;;  %v428_v26 = vld [vmem:[%s595_s5 + $0x18] sm:$0xff]   ;;  %s318_s5 = sshll.u32 %s455_s14, 4  ;;  %s319_s5 = int_to_ptr.vmem [resolvable:$true] %s318_s5 }
  0x13   :  { %385 = vmatpush3.bf16.msra.mxu1 %v420_v10  ;;  %400 = vmatprep.subr.bf16.mxu0 %v453_v1  ;;  %v332_v27 = vld [vmem:[%s594_s4] ss:$0 sm:$0xff]  ;;  %s429_s4 = scalar_lea.vmem %s319_s5, 128  ;;  %p434_p1 = scmp.lt.s32.totalorder %s319_s5, %s319_s5 }
  0x14   :  { %386 = vmatprep.subr.bf16.mxu1 %v453_v1  ;;  %v341_v35 = vld [vmem:[%s596_s6] ss:$0 sm:$0xff]  ;;  %p430_p0 = scmp.ne.s32.totalorder %s319_s5, %s429_s4  ;;  %p435_p2 = scmp.lt.s32.totalorder %s429_s4, %s429_s4 }
  0x16   :  { %401 = vmatpush3.bf16.msra.mxu0 %v426_v16  ;;  %p436_p3 = por %p435_p2, %p434_p1 }
  0x17   :  { %387 = vmatpush3.bf16.msra.mxu1 %v421_v11  ;;  %402 = vmatprep.subr.bf16.mxu0 %v453_v1 }
  0x18   :  { %388 = vmatprep.subr.bf16.mxu1 %v453_v1  ;;  %p437_p4 = pnand %p436_p3, %p430_p0 }
  0x1a   :  { %403 = vmatpush3.bf16.msra.mxu0 %v427_v25 }
  0x1b   :  { %389 = vmatpush3.bf16.msra.mxu1 %v422_v12  ;;  %404 = vmatprep.subr.bf16.mxu0 %v453_v1 }
  0x1c   :  { %390 = vmatprep.subr.bf16.mxu1 %v453_v1 }
  0x1e   :  { %405 = vmatpush3.bf16.msra.mxu0 %v428_v26 }
  0x1f   :  { %391 = vmatpush3.bf16.msra.mxu1 %v423_v13 }
  0x20   :  { %392 = vmatprep.subr.bf16.mxu1 %v453_v1 }
  0x23   :  { %393 = vmatpush3.bf16.msra.mxu1 %v424_v14 }
  0xe4   :  { %v106_v18 = vpop.f32.mrb[0].mxu0 }
  0xe5   :  { %v107_v19 = vadd.f32 %v326_v17, %v106_v18  ;;  %v376_v20 = vpop.f32.mrb[1].mxu0 }
  0xe6   :  { %v109_v21 = vpop.f32.mrb[2].mxu0 }
  0xe7   :  { %v112_v22 = vmax.f32 %v107_v19, 0.0  ;;  %v377_v23 = vpop.f32.mrb[3].mxu0 }
  0xe9   :  { %v113_v24 = vpack.c.bf16 %v112_v22, %v112_v22 }
  0xeb   :  { %395 = vmatmul.mubr.bf16.vlgmr.msra.gmra.mrb[0].mxu1 %v113_v24 }
 0x1be   :  { %v219_v28 = vpop.f32.mrb[0].mxu1 }
 0x1bf   :  { %v220_v29 = vadd.f32 %v332_v27, %v219_v28  ;;  %v396_v30 = vpop.f32.mrb[1].mxu1 }
 0x1c0   :  { %v222_v31 = vpop.f32.mrb[2].mxu1 }
 0x1c1   :  { %v225_v32 = vmax.f32 %v220_v29, 0.0  ;;  %v397_v33 = vpop.f32.mrb[3].mxu1 }
 0x1c3   :  { %v226_v34 = vpack.c.bf16 %v225_v32, %v225_v32 }
 0x1c5   :  { %407 = vmatmul.mubr.msk.bf16.vlgmr.msra.gmra.mrb[4].mxu0 %vm266_vm3, %v226_v34 }
 0x298   :  { %v304_v36 = vpop.f32.mrb[4].mxu0 }
 0x299   :  { %v305_v37 = vadd.f32 %v341_v35, %v304_v36  ;;  %v408_v38 = vpop.f32.mrb[5].mxu0 }
 0x29a   :  { %v307_v39 = vpop.f32.mrb[6].mxu0 }
 0x29b   :  { %v409_v40 = vpop.f32.mrb[7].mxu0  ;;  %311 = vst.msk [vmem:[#allocation2] sm:$0xff] %vm310_vm4, %v305_v37 }
 0x29c   :  { %440 = shalt.err (!%p437_p4)
}
 0x29d   :  { %s441_s6 = scalar_lea.hbm %s597_s7, 128 }
 0x29e   :  { %p442_p5 = scmp.ne.s32.totalorder %s597_s7, %s441_s6  ;;  %p445_p6 = scmp.lt.u32.totalorder %s441_s6, %s597_s7 }
 0x2a0   :  { %p447_p7 = pnand %p445_p6, %p442_p5 }
 0x2a2   :  { %450 = shalt.err (!%p447_p7)
}
 0x2a3   :  { %321 = dma.vmem_to_hbm [thread:$0]  %s319_s5, 128, %s597_s7, [#allocation3]  }
 0x2a4   :  { %451 = dma.done.wait [#allocation3], 128  }
 0x2a5   :  { %452 = vsyncadd [#allocation3], 4294967168 }
 0x2a6   :  { %325 = vsyncpa [#allocation3], 1 }

</bundles_post_ra>
